<compile_context>
chip_gen: v7x
topology: tpu7x:2x2x1
jax: 0.10.0
libtpu: 0.0.40
codegen_flags: <defaults>
</compile_context>

<pallas_src>
import jax
import jax.numpy as jnp
from jax.experimental import pallas as pl
from jax.experimental.pallas import tpu as pltpu


def _round_up(x, m):
    return ((x + m - 1) // m) * m


# ----------------------------- kernels ------------------------------------- #

def _invconv_kernel_stacked(wl_ref, wr_ref, x1_ref, x2_ref, o1_ref, o2_ref):
    """One (spatial-tile, batch) step: y = [W11 W12; W21 W22] @ [x1; x2], two matmuls."""
    x1 = x1_ref[0]                                   # (Cf, TN)
    x2 = x2_ref[0]                                   # (Cf, TN)
    y = (jnp.dot(wl_ref[...], x1, preferred_element_type=jnp.float32)
         + jnp.dot(wr_ref[...], x2, preferred_element_type=jnp.float32))   # (2Cf, TN)
    c = o1_ref.shape[1]
    o1_ref[0] = y[:c].astype(o1_ref.dtype)
    o2_ref[0] = y[c:].astype(o2_ref.dtype)


def _invconv_kernel_quadrant(w11_ref, w12_ref, w21_ref, w22_ref,
                             x1_ref, x2_ref, o1_ref, o2_ref):
    """Fallback (unaligned channel count): four quadrant matmuls."""
    x1 = x1_ref[0]
    x2 = x2_ref[0]
    y1 = (jnp.dot(w11_ref[...], x1, preferred_element_type=jnp.float32)
          + jnp.dot(w12_ref[...], x2, preferred_element_type=jnp.float32))
    y2 = (jnp.dot(w21_ref[...], x1, preferred_element_type=jnp.float32)
          + jnp.dot(w22_ref[...], x2, preferred_element_type=jnp.float32))
    o1_ref[0] = y1.astype(o1_ref.dtype)
    o2_ref[0] = y2.astype(o2_ref.dtype)


# ----------------------------- tiling helpers ------------------------------- #

def _target_block_bytes():
    """Per-(Cf, tn) block target: bigger amortizes the ~0.35us per-step overhead."""
    try:
        kind = jax.devices()[0].device_kind.lower()
    except Exception:
        kind = ""
    if "v5" in kind:
        return 1 << 20     # v5e: slower HBM, smaller scoped VMEM -> 1 MiB blocks
    return 2 << 20         # v6e / v7x: 2 MiB blocks (16 MiB double-buffered total)


def _choose_tiling(hw, c_eff, itemsize, target_bytes):
    """Pick (tn, hw_padded): tn is a multiple of 128 dividing hw_padded.

    Prefers a tn that divides round_up(hw, 128) so no extra pad beyond lane
    alignment (no extra HBM copy passes); pads only when hw's factorization
    would force very small tiles.
    """
    hw128 = _round_up(hw, 128)
    max_tn = max(128, min(hw128,
                          (target_bytes // max(1, c_eff * itemsize)) // 128 * 128))
    units = hw128 // 128
    best = 128
    for d in range(1, units + 1):
        if units % d == 0 and d * 128 <= max_tn:
            best = d * 128
    if hw128 <= max_tn or best * 4 >= max_tn:
        return best, hw128
    # Ragged factorization (rare for power-of-two H*W): pad to a multiple of max_tn
    # and slice the outputs afterwards (costs one extra pad/slice pass).
    return max_tn, _round_up(hw, max_tn)


# ----------------------------- pallas wrapper ------------------------------- #

def _conv1x1_pallas(x1, x2, w, *, donate_inputs=False):
    """Per-pixel channel mixing y = W @ concat([x1, x2], ch), returned as two halves."""
    B, C, H, W_ = x1.shape
    HW = H * W_
    dtype = x1.dtype
    itemsize = jnp.dtype(dtype).itemsize

    # Channel fold: pack spatial into sublanes when C < 8 (pure reshape/view).
    k = 1
    if C < 8 and 8 % C == 0 and HW % (8 // C) == 0:
        k = 8 // C
    Cf = C * k
    HWf = HW // k

    # Spatial tiling: lane-aligned, no extra padding in the common case.
    tn, HWfp = _choose_tiling(HWf, Cf, itemsize, _target_block_bytes())

    x1r = x1.reshape(B, Cf, HWf)
    x2r = x2.reshape(B, Cf, HWf)
    if HWfp != HWf:
        # Rare fallback; padded pixels are independent and sliced off below.
        pad = ((0, 0), (0, 0), (0, HWfp - HWf))
        x1r = jnp.pad(x1r, pad)
        x2r = jnp.pad(x2r, pad)

    # Weight prep (tiny; stays float32 for precision regardless of activation dtype).
    w = w.astype(jnp.float32)
    if k > 1:
        w = jnp.kron(w, jnp.eye(k, dtype=jnp.float32))   # (2Cf, 2Cf)

    n_sp = HWfp // tn
    grid = (n_sp, B)                                      # spatial axis first (larger)
    xspec = pl.BlockSpec((1, Cf, tn), lambda j, b: (b, 0, j))   # lane-dense tiles

    if Cf % 8 == 0:
        kernel = _invconv_kernel_stacked
        weights = (w[:, :Cf], w[:, Cf:])                  # Wl (2Cf,Cf), Wr (2Cf,Cf)
        wspecs = [pl.BlockSpec((2 * Cf, Cf), lambda j, b: (0, 0))] * 2
        x_in_offset = 2
    else:
        kernel = _invconv_kernel_quadrant
        weights = (w[:Cf, :Cf], w[:Cf, Cf:], w[Cf:, :Cf], w[Cf:, Cf:])
        wspecs = [pl.BlockSpec((Cf, Cf), lambda j, b: (0, 0))] * 4
        x_in_offset = 4

    aliases = {x_in_offset: 0, x_in_offset + 1: 1} if donate_inputs else {}

    # VMEM budget: 4 activation streams x 2 buffers x block + headroom (<= 32 MiB,
    # safe on v5e/v6e (128 MiB physical) and v7x (64 MiB physical)).
    block_bytes = Cf * tn * itemsize
    vmem_limit = int(min(32 << 20, max(16 << 20, 8 * block_bytes + (4 << 20))))

    cost = pl.CostEstimate(
        flops=2 * B * HW * (2 * C) * (2 * C),
        transcendentals=0,
        bytes_accessed=4 * B * C * HW * itemsize + 2 * (2 * C) * (2 * C) * 4,
    )

    y1, y2 = pl.pallas_call(
        kernel,
        out_shape=(jax.ShapeDtypeStruct((B, Cf, HWfp), dtype),
                   jax.ShapeDtypeStruct((B, Cf, HWfp), dtype)),
        grid_spec=pltpu.PrefetchScalarGridSpec(
            num_scalar_prefetch=0,
            grid=grid,
            in_specs=list(wspecs) + [xspec, xspec],
            out_specs=[xspec, xspec],
        ),
        compiler_params=pltpu.CompilerParams(
            dimension_semantics=("parallel", "parallel"),
            vmem_limit_bytes=vmem_limit,
        ),
        cost_estimate=cost,
        input_output_aliases=aliases,
    )(*weights, x1r, x2r)

    if HWfp != HWf:
        y1 = y1[:, :, :HWf]
        y2 = y2[:, :, :HWf]
    return y1.reshape(B, C, H, W_), y2.reshape(B, C, H, W_)


def inv_conv_forward(x, sldj, weight, reverse=False, donate_inputs=False):
    """Pallas TPU forward of Flow++ InvConv.

    Args:
      x: tuple of two (B, C, H, W) arrays (matching the torch module's tuple input).
      sldj: (B,) running sum of log-determinants.
      weight: (2C, 2C) invertible mixing matrix.
      reverse: apply the inverse transform.
      donate_inputs: alias x buffers with the outputs (only if the caller can donate).
    Returns:
      ((y1, y2), sldj_out) with y1, y2 of shape (B, C, H, W).
    """
    x1, x2 = x
    _, _, H, W_ = x1.shape
    # TODO(synk): slogdet / matrix inverse (pivoted LU on the tiny (2C,2C) weight)
    # have no clean Pallas equivalent; they stay in the XLA wrapper.  Reverse path
    # inverts in f32 (torch uses float64) -> larger reconstruction error for
    # ill-conditioned W.
    ldj = jnp.linalg.slogdet(weight)[1] * (H * W_)
    if reverse:
        w_use = jnp.linalg.inv(weight)
        sldj_out = sldj - ldj
    else:
        w_use = weight
        sldj_out = sldj + ldj
    y1, y2 = _conv1x1_pallas(x1, x2, w_use, donate_inputs=donate_inputs)
    return (y1, y2), sldj_out


# ----------------------------- reference & test ----------------------------- #

def _inv_conv_ref(x, sldj, weight, reverse=False):
    """Pure-JAX reference matching the PyTorch module."""
    x1, x2 = x
    xc = jnp.concatenate([x1, x2], axis=1)
    _, _, H, W_ = xc.shape
    ldj = jnp.linalg.slogdet(weight)[1] * (H * W_)
    if reverse:
        w_use = jnp.linalg.inv(weight)
        sldj = sldj - ldj
    else:
        w_use = weight
        sldj = sldj + ldj
    y = jnp.einsum("oi,bihw->bohw", w_use, xc,
                   precision=jax.lax.Precision.HIGHEST)
    y1, y2 = jnp.split(y, 2, axis=1)
    return (y1, y2), sldj


if __name__ == "__main__":
    key = jax.random.PRNGKey(0)
    k1, k2, k3, k4 = jax.random.split(key, 4)
    B, C, H, W = 2, 4, 16, 16           # InvConv(num_channels=4) -> 2C = 8 channels
    x1 = jax.random.normal(k1, (B, C, H, W), dtype=jnp.float32)
    x2 = jax.random.normal(k2, (B, C, H, W), dtype=jnp.float32)
    sldj = jax.random.normal(k3, (B,), dtype=jnp.float32)
    # "noisy identity" init, as in the torch module (random_init=False).
    weight = (jnp.eye(2 * C, dtype=jnp.float32)
              + 1e-3 * jax.random.normal(k4, (2 * C, 2 * C), dtype=jnp.float32))

    # Forward
    (y1, y2), sldj_out = inv_conv_forward((x1, x2), sldj, weight, reverse=False)
    jax.block_until_ready((y1, y2, sldj_out))
    (r1, r2), sldj_ref = _inv_conv_ref((x1, x2), sldj, weight, reverse=False)
    assert jnp.allclose(y1, r1, rtol=1e-4, atol=1e-4), float(jnp.max(jnp.abs(y1 - r1)))
    assert jnp.allclose(y2, r2, rtol=1e-4, atol=1e-4), float(jnp.max(jnp.abs(y2 - r2)))
    assert jnp.allclose(sldj_out, sldj_ref, rtol=1e-5, atol=1e-5), (sldj_out, sldj_ref)

    # Reverse
    (z1, z2), sldj_rev = inv_conv_forward((x1, x2), sldj, weight, reverse=True)
    jax.block_until_ready((z1, z2, sldj_rev))
    (q1, q2), sldj_rref = _inv_conv_ref((x1, x2), sldj, weight, reverse=True)
    assert jnp.allclose(z1, q1, rtol=1e-4, atol=1e-4), float(jnp.max(jnp.abs(z1 - q1)))
    assert jnp.allclose(z2, q2, rtol=1e-4, atol=1e-4), float(jnp.max(jnp.abs(z2 - q2)))
    assert jnp.allclose(sldj_rev, sldj_rref, rtol=1e-5, atol=1e-5), (sldj_rev, sldj_rref)

    print("KERNEL_OK")
</pallas_src>

<mosaic_0001>
module attributes {stable_mosaic.version = 11 : i64} {
  func.func @_invconv_kernel_stacked(%arg0: i32, %arg1: i32, %arg2: memref<16x8xf32, #tpu.memory_space<vmem>>, %arg3: memref<16x8xf32, #tpu.memory_space<vmem>>, %arg4: memref<1x8x128xf32, #tpu.memory_space<vmem>>, %arg5: memref<1x8x128xf32, #tpu.memory_space<vmem>>, %arg6: memref<1x8x128xf32, #tpu.memory_space<vmem>>, %arg7: memref<1x8x128xf32, #tpu.memory_space<vmem>>) attributes {dimension_semantics = [#tpu.dimension_semantics<parallel>, #tpu.dimension_semantics<parallel>], iteration_bounds = array<i64: 1, 2>, scalar_prefetch = 0 : i64, scratch_operands = 0 : i64, tpu.core_type = #tpu.core_type<tc>, window_params = [{pipeline_mode = #tpu.pipeline_mode<synchronous>, transform_indices = @transform_0, window_bounds = array<i64: 16, 8>}, {pipeline_mode = #tpu.pipeline_mode<synchronous>, transform_indices = @transform_1, window_bounds = array<i64: 16, 8>}, {transform_indices = @transform_2, window_bounds = array<i64: 1, 8, 128>}, {transform_indices = @transform_3, window_bounds = array<i64: 1, 8, 128>}, {transform_indices = @transform_4, window_bounds = array<i64: 1, 8, 128>}, {transform_indices = @transform_5, window_bounds = array<i64: 1, 8, 128>}]} {
    %c0 = arith.constant 0 : index
    %c0_0 = arith.constant 0 : index
    %c0_1 = arith.constant 0 : index
    %0 = vector.load %arg4[%c0, %c0_0, %c0_1] : memref<1x8x128xf32, #tpu.memory_space<vmem>>, vector<1x8x128xf32>
    %1 = vector.shape_cast %0 : vector<1x8x128xf32> to vector<8x128xf32>
    %c0_2 = arith.constant 0 : index
    %c0_3 = arith.constant 0 : index
    %c0_4 = arith.constant 0 : index
    %2 = vector.load %arg5[%c0_2, %c0_3, %c0_4] : memref<1x8x128xf32, #tpu.memory_space<vmem>>, vector<1x8x128xf32>
    %3 = vector.shape_cast %2 : vector<1x8x128xf32> to vector<8x128xf32>
    %c0_5 = arith.constant 0 : index
    %c0_6 = arith.constant 0 : index
    %4 = vector.load %arg2[%c0_5, %c0_6] : memref<16x8xf32, #tpu.memory_space<vmem>>, vector<16x8xf32>
    %cst = arith.constant dense<0.000000e+00> : vector<16x128xf32>
    %5 = tpu.matmul %4, %1, %cst {dimension_numbers = #tpu.dot_dimension_numbers<[1], [0], [0], [1], [0, 0, 1, 1], [], []>} : vector<16x8xf32>, vector<8x128xf32>, vector<16x128xf32> -> vector<16x128xf32>
    %c0_7 = arith.constant 0 : index
    %c0_8 = arith.constant 0 : index
    %6 = vector.load %arg3[%c0_7, %c0_8] : memref<16x8xf32, #tpu.memory_space<vmem>>, vector<16x8xf32>
    %cst_9 = arith.constant dense<0.000000e+00> : vector<16x128xf32>
    %7 = tpu.matmul %6, %3, %cst_9 {dimension_numbers = #tpu.dot_dimension_numbers<[1], [0], [0], [1], [0, 0, 1, 1], [], []>} : vector<16x8xf32>, vector<8x128xf32>, vector<16x128xf32> -> vector<16x128xf32>
    %8 = arith.addf %5, %7 : vector<16x128xf32>
    %9 = vector.extract_strided_slice %8 {offsets = [0, 0], sizes = [8, 128], strides = [1, 1]} : vector<16x128xf32> to vector<8x128xf32>
    %c0_10 = arith.constant 0 : index
    %c0_11 = arith.constant 0 : index
    %c0_12 = arith.constant 0 : index
    %10 = vector.load %arg6[%c0_10, %c0_11, %c0_12] : memref<1x8x128xf32, #tpu.memory_space<vmem>>, vector<1x8x128xf32>
    %11 = vector.shape_cast %10 : vector<1x8x128xf32> to vector<8x128xf32>
    %12 = vector.shape_cast %9 : vector<8x128xf32> to vector<1x8x128xf32>
    tpu.vector_store %arg6[%c0_10, %c0_11, %c0_12], %12 {strides = array<i32>} : memref<1x8x128xf32, #tpu.memory_space<vmem>>, vector<1x8x128xf32>,
    %13 = vector.extract_strided_slice %8 {offsets = [8, 0], sizes = [8, 128], strides = [1, 1]} : vector<16x128xf32> to vector<8x128xf32>
    %c0_13 = arith.constant 0 : index
    %c0_14 = arith.constant 0 : index
    %c0_15 = arith.constant 0 : index
    %14 = vector.load %arg7[%c0_13, %c0_14, %c0_15] : memref<1x8x128xf32, #tpu.memory_space<vmem>>, vector<1x8x128xf32>
    %15 = vector.shape_cast %14 : vector<1x8x128xf32> to vector<8x128xf32>
    %16 = vector.shape_cast %13 : vector<8x128xf32> to vector<1x8x128xf32>
    tpu.vector_store %arg7[%c0_13, %c0_14, %c0_15], %16 {strides = array<i32>} : memref<1x8x128xf32, #tpu.memory_space<vmem>>, vector<1x8x128xf32>,
    return
  }
  func.func @transform_0(%arg0: i32, %arg1: i32) -> (i32, i32) {
    %c0_i32 = arith.constant 0 : i32
    %c0_i32_0 = arith.constant 0 : i32
    %c0_i32_1 = arith.constant 0 : i32
    return %c0_i32, %c0_i32_0 : i32, i32
  }
  func.func @transform_1(%arg0: i32, %arg1: i32) -> (i32, i32) {
    %c0_i32 = arith.constant 0 : i32
    %c0_i32_0 = arith.constant 0 : i32
    %c0_i32_1 = arith.constant 0 : i32
    return %c0_i32, %c0_i32_0 : i32, i32
  }
  func.func @transform_2(%arg0: i32, %arg1: i32) -> (i32, i32, i32) {
    %c0_i32 = arith.constant 0 : i32
    %c0_i32_0 = arith.constant 0 : i32
    return %arg1, %c0_i32, %arg0 : i32, i32, i32
  }
  func.func @transform_3(%arg0: i32, %arg1: i32) -> (i32, i32, i32) {
    %c0_i32 = arith.constant 0 : i32
    %c0_i32_0 = arith.constant 0 : i32
    return %arg1, %c0_i32, %arg0 : i32, i32, i32
  }
  func.func @transform_4(%arg0: i32, %arg1: i32) -> (i32, i32, i32) {
    %c0_i32 = arith.constant 0 : i32
    %c0_i32_0 = arith.constant 0 : i32
    return %arg1, %c0_i32, %arg0 : i32, i32, i32
  }
  func.func @transform_5(%arg0: i32, %arg1: i32) -> (i32, i32, i32) {
    %c0_i32 = arith.constant 0 : i32
    %c0_i32_0 = arith.constant 0 : i32
    return %arg1, %c0_i32, %arg0 : i32, i32, i32
  }
}

</mosaic_0001>

<bundles_post_ra>
// kernel: tpu_custom_call.1
= control target key start
LH: loop header
LB: loop body
LE: loop exit
PB: predicated region body
PF: predicated region fallthrough
CT: control target
= control target key end

     0   :  { %11 = vsyncpa [#allocation3], 0  ;;  %s1015_s0 = inlined_call_operand.vmem [shape: f32[16,8], index: 0, kind: input, shape index: {}]   ;;  %s1016_s1 = inlined_call_operand.vmem [shape: f32[16,8], index: 1, kind: input, shape index: {}]   ;;  %s1017_s2 = inlined_call_operand.vmem [shape: f32[2,8,128], index: 2, kind: input, shape index: {}]   ;;  %s1018_s3 = inlined_call_operand.vmem [shape: f32[2,8,128], index: 3, kind: input, shape index: {}]   ;;  %s1019_s4 = inlined_call_operand.hbm [shape: f32[2,8,128], index: 4, kind: output, shape index: {0}]   ;;  %s1020_s5 = inlined_call_operand.hbm [shape: f32[2,8,128], index: 5, kind: output, shape index: {1}]  }
   0x1   :  { %13 = vsyncpa [#allocation3 + $0x1], 0 }
   0x2   :  { %14 = vsyncpa [#allocation5], 0 }
   0x3   :  { %16 = vsyncpa [#allocation5 + $0x1], 0  ;;  %s851_s18 = smov 0   ;;  %s853_s19 = smov 0  }
   0x4   :  { %s855_s20 = smov 0   ;;  %s857_s21 = smov 0  }
   0x5   :  { %s859_s22 = smov 0   ;;  %s861_s23 = smov 0  }
   0x6 LB: > { %s610_s24 = sadd.s32 4294967295, %s817_s23   ;;  %s611_s25 = sadd.s32 4294967294, %s817_s23   ;;  %s817_s23 = sphi %s861_s23, %s22_s23   ;;  %s813_s22 = sphi %s859_s22, %s1027_s22   ;;  %s809_s21 = sphi %s857_s21, %s1026_s21   ;;  %s805_s20 = sphi %s855_s20, %s1025_s20   ;;  %s801_s19 = sphi %s853_s19, %s1024_s19   ;;  %s797_s18 = sphi %s851_s18, %s1023_s18  }
   0x7   : > { %s31_s26 = sadd.s32 1, %s813_s22  ;;  %s141_s27 = sadd.s32 1, %s805_s20 }
   0x8   : > { %p32_p0 = scmp.ge.s32.totalorder %s31_s26, 2  ;;  %p151_p1 = scmp.ne.s32.totalorder %s805_s20, %s801_s19 }
   0x9   : > { %p152_p2 = scmp.eq.s32.totalorder %s610_s24, 1  ;;  %p157_p3 = scmp.ne.s32.totalorder %s801_s19, %s797_s18 }
   0xa   : > { %s1029_s26 = smov (%p32_p0, %s31_s26), 0  ;;  %p158_p5 = scmp.eq.s32.totalorder %s611_s25, 1 }
   0xb   : > { %p891_p4 = por %p152_p2, %p151_p1  ;;  %s136_s29 = ssub.s32 %s813_s22, %s1029_s26 }
   0xc   : > { %p614_p6 = scmp.ge.s32.totalorder %s817_s23, 1  ;;  %p139_p7 = scmp.eq.s32.totalorder %s136_s29, 0 }
   0xd   : > { %p898_p8 = por %p158_p5, %p157_p3  ;;  %p230_p9 = scmp.lt.s32.totalorder %s817_s23, 3 }
   0xe   : > { %s904_s6 = scalar_select %p139_p7, %s805_s20, %s141_s27  }
   0xf   : > { %p231_p10 = pnand %p614_p6, %p230_p9 }
  0x10   : > { %p272_p11 = scmp.lt.s32.totalorder (!%p231_p10), %s809_s21, 1  ;;  %v290_v0 = vld [vmem:[%s1016_s1] sm:$0xff] (!%p231_p10)  ;;  %vm292_vm0 = vcmask (!%p231_p10), 64512   ;;  %v291_v2 = vld [vmem:[%s1016_s1 + $0x8] sm:$0xff] (!%p231_p10)  ;;  %s931_s8 = sand.u32 (!%p231_p10), 1, %s801_s19  }
  0x11   : > { %234 = sbr.rel (%p231_p10) target bundleno = 284 (0x11c), region = 36  ;;  %v288_v1 = vld [vmem:[%s1015_s0] sm:$0xff] (!%p231_p10)  ;;  %637 = vmatprep.mubr.msk.f32.mxu1 (!%p231_p10), %vm292_vm0, %v290_v0  ;;  %v289_v5 = vld [vmem:[%s1015_s0 + $0x8] sm:$0xff] (!%p231_p10)  ;;  %s615_s9 = sshll.u32 (!%p231_p10), %s931_s8, 3 }
  0x12   : > { %642 = vmatprep.mubr.msk.f32.mxu0 (!%p231_p10), %vm292_vm0, %v288_v1  ;;  %s625_s10 = sshll.u32 (!%p231_p10), %s809_s21, 7  ;;  %s264_s13 = scalar_lea.vmem (!%p231_p10), [#allocation2], %s615_s9 }
  0x13   : > { %s477_s14 = sshll.u32 (!%p231_p10), %s264_s13, 4  ;;  %s938_s17 = scalar_lea.hbm (!%p231_p10), %s1020_s5, %s625_s10  ;;  %s947_s14 = int_to_ptr.vmem [resolvable:$true] %s477_s14 }
  0x14   : > { %s945_s25 = scalar_lea.hbm (!%p231_p10), %s1019_s4, %s625_s10  ;;  %s463_s27 = scalar_lea.sflag (!%p231_p10), [#allocation5], %s931_s8 }
  0x15   : > { %s819_s7 = smov (!%p231_p10), [#allocation4]  }
  0x18   : > { %s273_s11 = scalar_select %p272_p11, %s809_s21, 1 }
  0x1a   : > { %s617_s12 = sshll.u32 %s273_s11, 3  ;;  %s271_s11 = scalar_lea.vmem [#allocation4], %s615_s9 }
  0x1b   : > { %s285_s15 = scalar_lea.vmem %s1018_s3, %s617_s12  ;;  %s278_s24 = scalar_lea.vmem %s1017_s2, %s617_s12 }
  0x1c   : > { %v287_v3 = vld [vmem:[%s285_s15] sm:$0xff]  ;;  %s491_s12 = sshll.u32 %s271_s11, 4  ;;  %s711_s9 = sshll.u32 %s819_s7, 4  ;;  %s940_s12 = int_to_ptr.vmem [resolvable:$true] %s491_s12  ;;  %s712_s9 = int_to_ptr.vmem [resolvable:$false] %s711_s9 }
  0x1d   : > { %v286_v4 = vld [vmem:[%s278_s24] sm:$0xff]  ;;  %635 = vmatprep.subr.mxu1 %v287_v3  ;;  %s707_s29 = scalar_lea.vmem %s940_s12, 128  ;;  %s713_s15 = scalar_lea.vmem %s712_s9, 256 }
  0x1e   : > { %640 = vmatprep.subr.mxu0 %v286_v4  ;;  %636 = vmatpush3.msra.mxu1 %v287_v3  ;;  %p708_p12 = scmp.ne.s32.totalorder %s940_s12, %s707_s29  ;;  %p714_p1 = scmp.lt.s32.totalorder %s940_s12, %s712_s9 }
  0x1f   : > { %641 = vmatpush3.msra.mxu0 %v286_v4  ;;  %638 = vmatmul.mubr.msk.f32.vlgmr.msra.gmra.mrb[0].mxu1 %vm292_vm0, %v291_v2  ;;  %p715_p2 = scmp.lt.s32.totalorder %s713_s15, %s707_s29 }
  0x20   : > { %643 = vmatmul.mubr.msk.f32.vlgmr.msra.gmra.mrb[0].mxu0 %vm292_vm0, %v289_v5  ;;  %p709_p13 = pnand %p708_p12, %p891_p4 }
  0x21   : > { %p716_p3 = por %p715_p2, %p714_p1 }
  0x22   : > { %p710_p0 = pneg %p709_p13 }
  0x24   : > { %p717_p5 = pnand %p716_p3, %p710_p0 }
  0xf2   : > { %v639_v6 = vpop.f32.mrb[0].mxu1 }
  0xf3   : > { %v644_v7 = vpop.f32.mrb[0].mxu0  ;;  %v365_v9 = vpop.f32.mrb[1].mxu1 }
  0xf4   : > { %v452_v8 = vadd.f32 %v644_v7, %v639_v6  ;;  %v446_v10 = vpop.f32.mrb[1].mxu0 }
  0xf5   : > { %v447_v11 = vadd.f32 %v446_v10, %v365_v9 }
  0xf6   : > { %456 = vst [vmem:[%s271_s11] sm:$0xff] %v452_v8 }
  0xf7   : > { %455 = vst [vmem:[%s264_s13] sm:$0xff] %v447_v11 }
  0xf8   : > { %720 = shalt.err (!%p717_p5)
}
  0xf9   : > { %s721_s10 = scalar_lea.hbm %s938_s17, 128  ;;  %s725_s16 = scalar_lea.hbm %s1020_s5, 256 }
  0xfa   : > { %p722_p6 = scmp.ne.s32.totalorder %s938_s17, %s721_s10  ;;  %p726_p10 = scmp.lt.u32.totalorder %s938_s17, %s1020_s5 }
  0xfb   : > { %p727_p11 = scmp.lt.u32.totalorder %s725_s16, %s721_s10  ;;  %p729_p13 = scmp.lt.u32.totalorder %s721_s10, %s938_s17 }
  0xfc   : > { %p723_p7 = pnand %p722_p6, %p891_p4 }
  0xfd   : > { %p728_p12 = por %p727_p11, %p726_p10 }
  0xfe   : > { %p724_p9 = pneg %p723_p7 }
  0xff   : > { %p730_p0 = por %p729_p13, %p728_p12 }
 0x101   : > { %p731_p1 = pnand %p730_p0, %p724_p9 }
 0x103   : > { %734 = shalt.err (!%p731_p1)
}
 0x104   : > { %648 = dma.vmem_to_hbm [thread:$0]  (%p891_p4), %s940_s12, 128, %s938_s17, %s463_s27  }
 0x105   : > { %s458_s29 = scalar_lea.sflag [#allocation3], %s931_s8  ;;  %s735_s7 = scalar_lea.vmem %s947_s14, 128 }
 0x106   : > { %p736_p2 = scmp.ne.s32.totalorder %s947_s14, %s735_s7  ;;  %s820_s9 = smov [#allocation2]  }
 0x107   : > { %s739_s15 = sshll.u32 %s820_s9, 4  ;;  %s740_s15 = int_to_ptr.vmem [resolvable:$false] %s739_s15 }
 0x108   : > { %p737_p3 = pnand %p736_p2, %p891_p4  ;;  %s741_s10 = scalar_lea.vmem %s740_s15, 256 }
 0x109   : > { %p742_p6 = scmp.lt.s32.totalorder %s947_s14, %s740_s15  ;;  %p743_p7 = scmp.lt.s32.totalorder %s741_s10, %s735_s7 }
 0x10a   : > { %p738_p5 = pneg %p737_p3 }
 0x10b   : > { %p744_p9 = por %p743_p7, %p742_p6 }
 0x10d   : > { %p745_p10 = pnand %p744_p9, %p738_p5 }
 0x10f   : > { %748 = shalt.err (!%p745_p10)
}
 0x110   : > { %s749_s8 = scalar_lea.hbm %s945_s25, 128  ;;  %s753_s27 = scalar_lea.hbm %s1019_s4, 256 }
 0x111   : > { %p750_p11 = scmp.ne.s32.totalorder %s945_s25, %s749_s8  ;;  %p754_p0 = scmp.lt.u32.totalorder %s945_s25, %s1019_s4 }
 0x112   : > { %p755_p1 = scmp.lt.u32.totalorder %s753_s27, %s749_s8  ;;  %p757_p3 = scmp.lt.u32.totalorder %s749_s8, %s945_s25 }
 0x113   : > { %p751_p12 = pnand %p750_p11, %p891_p4 }
 0x114   : > { %p756_p2 = por %p755_p1, %p754_p0 }
 0x115   : > { %p752_p13 = pneg %p751_p12 }
 0x116   : > { %p758_p5 = por %p757_p3, %p756_p2 }
 0x118   : > { %p759_p6 = pnand %p758_p5, %p752_p13 }
 0x11a   : > { %762 = shalt.err (!%p759_p6)
}
 0x11b   : > { %647 = dma.vmem_to_hbm [thread:$0]  (%p891_p4), %s947_s14, 128, %s945_s25, %s458_s29  }
 0x11c PF: > { %p658_p7 = scmp.ge.s32.totalorder %s817_s23, 2  ;;  %s503_s16 = sand.u32 1, %s797_s18  }
 0x11d   : > { %s504_s21 = scalar_lea.sflag [#allocation3], %s503_s16 }
 0x11e   : > { %p652_p9 = pnand %p658_p7, %p898_p8 }
 0x120   : > { %788 = dma.done.wait (!%p652_p9), %s504_s21, 128  }
 0x121   : > { %790 = vsyncadd (!%p652_p9), %s504_s21, 4294967168  ;;  %s513_s24 = scalar_lea.sflag [#allocation5], %s503_s16 }
 0x122   : > { %792 = dma.done.wait (!%p652_p9), %s513_s24, 128  }
 0x123   : > { %794 = vsyncadd (!%p652_p9), %s513_s24, 4294967168  ;;  %s22_s23 = sadd.s32 1, %s817_s23   ;;  %s1023_s18 = smov %s801_s19 }
 0x124   : > { %p19_p10 = scmp.ge.s32.totalorder %s22_s23, 4   ;;  %s1024_s19 = smov %s805_s20 }
 0x125   : > { %s1025_s20 = smov %s904_s6  ;;  %s1026_s21 = smov %s813_s22 }
 0x126   : > { %s1027_s22 = smov %s1029_s26  ;;  %21 = sbr.rel (!%p19_p10) target bundleno = 6 (0x6), region = 91 }
 0x12d   :  { %518 = vsyncpa [#allocation3], 1 }
 0x12e   :  { %520 = vsyncpa [#allocation3 + $0x1], 1 }
 0x12f   :  { %521 = vsyncpa [#allocation5], 1 }
 0x130   :  { %523 = vsyncpa [#allocation5 + $0x1], 1 }

</bundles_post_ra>
